<compile_context>
chip_gen: v7x
topology: tpu7x:2x2x1
jax: 0.10.0
libtpu: 0.0.40
codegen_flags: <defaults>
</compile_context>

<pallas_src>
import functools

import numpy as np
import jax
import jax.numpy as jnp
from jax.experimental import pallas as pl
from jax.experimental.pallas import tpu as pltpu


def rg_lru_kernel(rt_ref, ltid_ref,                      # scalar prefetch (SMEM)
                  x_ref, y_ref, state_ref,
                  wp_ref, bpack_ref, yb_ref, na_ref,
                  out_ref, newstate_ref,
                  h_carry):
    b = pl.program_id(0)
    tt = pl.program_id(1)
    Tt = x_ref.shape[1]
    D = x_ref.shape[2]

    # Load the incoming recurrent state at the first time tile of each sequence.
    @pl.when(tt == 0)
    def _():
        h_carry[...] = state_ref[0].astype(jnp.float32)

    x = x_ref[0]                                  # (Tt, D)
    xf = x.astype(jnp.float32)

    # --- fused input/recurrent gates: single MXU dot against the packed block-diagonal
    # (D, 2D) weight.  bf16 operands, f32 accumulate.
    gates = jnp.dot(x.astype(jnp.bfloat16), wp_ref[...],
                    preferred_element_type=jnp.float32)          # (Tt, 2D)
    gates = jax.nn.sigmoid(gates + bpack_ref[...])
    gate_x = gates[:, :D]
    gate_a = gates[:, D:]

    # a = exp(gate_a * (-8 * softplus(A)))   (softplus precomputed in the wrapper)
    log_a = gate_a * na_ref[...]
    a = jnp.exp(log_a)
    mult = jnp.sqrt(jnp.maximum(1.0 - a * a, 0.0))

    row = jax.lax.broadcasted_iota(jnp.int32, (Tt, D), 0)
    t_glob = row + tt * Tt
    is_ctx = rt_ref[b] == 0                       # 0 = context, 1 = generation
    L = ltid_ref[b]                               # number of valid tokens

    reset = jnp.logical_and(t_glob == 0, is_ctx)  # context: reset at first token
    a = jnp.where(reset, 0.0, a)
    mult = jnp.where(reset, 1.0, mult)

    nx = xf * gate_x * mult
    valid = t_glob < L                            # padded tokens: freeze the state
    a = jnp.where(valid, a, 1.0)
    nx = jnp.where(valid, nx, 0.0)

    # --- vectorized associative (Hillis-Steele) scan over time within the tile:
    #     h_t = a_t * h_{t-1} + nx_t   ==>   h_t = scanA_t * h_in + scanB_t
    # The shift-by-s is an XLU sublane rotation (pltpu.roll) + a VPU select, so the
    # log2(Tt) scan steps do not materialize slice/concat VMEM copies.
    scanA = a
    scanB = nx
    s = 1
    while s < Tt:                                 # static, log2(Tt) full-tile steps
        a_prev = jnp.where(row < s, 1.0, pltpu.roll(scanA, shift=s, axis=0))
        b_prev = jnp.where(row < s, 0.0, pltpu.roll(scanB, shift=s, axis=0))
        scanB = scanA * b_prev + scanB            # order matters: uses pre-update scanA
        scanA = scanA * a_prev
        s *= 2

    h_in = h_carry[...]                           # (1, D) carry from previous tile
    h_all = scanA * h_in + scanB                  # (Tt, D)

    # --- fused output gate, single lane-dense full-tile store (padded rows -> 0).
    # TODO(synk): TRT-LLM plugin may use exact (erf) GELU; tanh approximation used here.
    gy = jax.nn.gelu(y_ref[0].astype(jnp.float32) + yb_ref[...], approximate=True)
    out_ref[0] = jnp.where(valid, h_all * gy, 0.0).astype(out_ref.dtype)

    h_last = h_all[Tt - 1:Tt, :]                  # already frozen at last valid token
    h_carry[...] = h_last

    # The new-state output block is revisited across the time axis; only the last tile's
    # value matters, so store once.
    @pl.when(tt == pl.num_programs(1) - 1)
    def _():
        newstate_ref[0] = h_last.astype(newstate_ref.dtype)


@functools.partial(jax.jit, static_argnames=("t_tile",))
def rg_lru_forward(x, y, y_bias, lru_state, host_request_types, last_token_ids,
                   wx, wa, bx, ba, A, t_tile=None):
    B, T, D = x.shape
    H, dh, _ = wx.shape
    if t_tile is None:
        t_tile = T if T <= 256 else 256
    assert T % t_tile == 0, "T must be divisible by the time tile"
    num_tt = T // t_tile

    # Pack the two grouped (block-diagonal) gate projections into one dense (D, 2D) RHS so
    # the kernel does a single bf16 MXU dot per time tile.
    # TODO(synk): for very large H*dh a per-head packed (H, dh, 2*dh) RHS would avoid the
    # block-diagonal zero FLOPs / weight footprint.
    wx_bd = jax.scipy.linalg.block_diag(*[wx[h] for h in range(H)])
    wa_bd = jax.scipy.linalg.block_diag(*[wa[h] for h in range(H)])
    w_pack = jnp.concatenate([wx_bd, wa_bd], axis=1).astype(jnp.bfloat16)       # (D, 2D)
    b_pack = jnp.concatenate([bx.reshape(D), ba.reshape(D)]).reshape(1, 2 * D)
    b_pack = b_pack.astype(jnp.float32)
    neg8sp_A = (-8.0 * jax.nn.softplus(A.astype(jnp.float32))).reshape(1, D)
    yb2 = y_bias.reshape(1, D).astype(jnp.float32)
    state3 = lru_state.reshape(B, 1, D)

    grid_spec = pltpu.PrefetchScalarGridSpec(
        num_scalar_prefetch=2,
        grid=(B, num_tt),
        in_specs=[
            pl.BlockSpec((1, t_tile, D), lambda b, t, rt, lt: (b, t, 0)),   # x
            pl.BlockSpec((1, t_tile, D), lambda b, t, rt, lt: (b, t, 0)),   # y
            pl.BlockSpec((1, 1, D), lambda b, t, rt, lt: (b, 0, 0)),        # lru_state
            pl.BlockSpec((D, 2 * D), lambda b, t, rt, lt: (0, 0)),          # packed gate W
            pl.BlockSpec((1, 2 * D), lambda b, t, rt, lt: (0, 0)),          # packed gate bias
            pl.BlockSpec((1, D), lambda b, t, rt, lt: (0, 0)),              # y_bias
            pl.BlockSpec((1, D), lambda b, t, rt, lt: (0, 0)),              # -8*softplus(A)
        ],
        out_specs=[
            pl.BlockSpec((1, t_tile, D), lambda b, t, rt, lt: (b, t, 0)),   # out
            pl.BlockSpec((1, 1, D), lambda b, t, rt, lt: (b, 0, 0)),        # new lru_state
        ],
        scratch_shapes=[pltpu.VMEM((1, D), jnp.float32)],                   # h carry across tiles
    )

    out, new_state = pl.pallas_call(
        rg_lru_kernel,
        grid_spec=grid_spec,
        out_shape=(jax.ShapeDtypeStruct((B, T, D), x.dtype),
                   jax.ShapeDtypeStruct((B, 1, D), lru_state.dtype)),
        compiler_params=pltpu.CompilerParams(
            dimension_semantics=("parallel", "arbitrary")),
    )(host_request_types, last_token_ids, x, y, state3,
      w_pack, b_pack, yb2, neg8sp_A)

    return out, new_state.reshape(B, D)


def rg_lru_reference(x, y, y_bias, lru_state, host_request_types, last_token_ids,
                     wx, wa, bx, ba, A):
    B, T, D = x.shape
    H, dh, _ = wx.shape
    # Round the matmul operands to bf16 to match the kernel's MXU operand precision
    # (accumulation stays f32 in both).
    xq = x.astype(jnp.bfloat16).astype(jnp.float32).reshape(B, T, H, dh)
    wxq = wx.astype(jnp.bfloat16).astype(jnp.float32)
    waq = wa.astype(jnp.bfloat16).astype(jnp.float32)
    gate_x = jnp.einsum('bthd,hde->bthe', xq, wxq,
                        precision=jax.lax.Precision.HIGHEST).reshape(B, T, D)
    gate_a = jnp.einsum('bthd,hde->bthe', xq, waq,
                        precision=jax.lax.Precision.HIGHEST).reshape(B, T, D)
    gate_x = jax.nn.sigmoid(gate_x + bx.reshape(1, 1, D))
    gate_a = jax.nn.sigmoid(gate_a + ba.reshape(1, 1, D))
    log_a = -8.0 * gate_a * jax.nn.softplus(A.reshape(1, 1, D))
    a = jnp.exp(log_a)
    mult = jnp.sqrt(jnp.maximum(1.0 - jnp.exp(2.0 * log_a), 0.0))
    is_ctx = (host_request_types == 0)[:, None, None]
    reset = jnp.logical_and(jnp.arange(T)[None, :, None] == 0, is_ctx)
    mult = jnp.where(reset, 1.0, mult)
    a = jnp.where(reset, 0.0, a)
    nx = x * gate_x * mult
    gy = jax.nn.gelu(y + y_bias.reshape(1, 1, D), approximate=True)

    h = lru_state
    outs = []
    for t in range(T):
        h_new = a[:, t] * h + nx[:, t]
        valid = (t < last_token_ids)[:, None]
        h = jnp.where(valid, h_new, h)
        outs.append(jnp.where(valid, h_new * gy[:, t], 0.0))
    return jnp.stack(outs, axis=1), h


if __name__ == "__main__":
    B, T, D, H = 2, 16, 128, 2          # batch, seq, lru_width, num_heads
    dh = D // H

    key = jax.random.PRNGKey(0)
    ks = jax.random.split(key, 9)
    x = jax.random.normal(ks[0], (B, T, D), jnp.float32)
    y = jax.random.normal(ks[1], (B, T, D), jnp.float32)
    y_bias = 0.1 * jax.random.normal(ks[2], (D,), jnp.float32)
    lru_state = jax.random.normal(ks[3], (B, D), jnp.float32)
    wx = jax.random.normal(ks[4], (H, dh, dh), jnp.float32) / np.sqrt(dh)
    wa = jax.random.normal(ks[5], (H, dh, dh), jnp.float32) / np.sqrt(dh)
    bx = 0.1 * jax.random.normal(ks[6], (H, dh), jnp.float32)
    ba = 0.1 * jax.random.normal(ks[7], (H, dh), jnp.float32)
    A = jax.random.normal(ks[8], (D,), jnp.float32)

    # 0 = context (prefill, reset at t=0), 1 = generation (continue from lru_state).
    host_request_types = jnp.array([0, 1], dtype=jnp.int32)
    # per-sequence number of valid tokens (padded batch-major layout)
    last_token_ids = jnp.array([T, 11], dtype=jnp.int32)
    # TODO(synk): slot_mapping-based paged state indexing is not implemented; state is
    # addressed directly by batch index.

    # t_tile=8 -> two time tiles, exercising the (1, D) carry across the time grid axis.
    out, new_state = rg_lru_forward(x, y, y_bias, lru_state, host_request_types,
                                    last_token_ids, wx, wa, bx, ba, A, t_tile=8)
    jax.block_until_ready((out, new_state))

    ref_out, ref_state = rg_lru_reference(x, y, y_bias, lru_state, host_request_types,
                                          last_token_ids, wx, wa, bx, ba, A)
    np.testing.assert_allclose(np.asarray(out), np.asarray(ref_out), rtol=2e-3, atol=2e-3)
    np.testing.assert_allclose(np.asarray(new_state), np.asarray(ref_state),
                               rtol=2e-3, atol=2e-3)

    print("KERNEL_OK")
</pallas_src>

<mosaic_0001>
module attributes {stable_mosaic.version = 11 : i64} {
  func.func @rg_lru_kernel(%arg0: i32, %arg1: i32, %arg2: memref<2xi32, #tpu.memory_space<smem>>, %arg3: memref<2xi32, #tpu.memory_space<smem>>, %arg4: memref<1x8x128xf32, #tpu.memory_space<vmem>>, %arg5: memref<1x8x128xf32, #tpu.memory_space<vmem>>, %arg6: memref<1x1x128xf32, #tpu.memory_space<vmem>>, %arg7: memref<128x256xbf16, #tpu.memory_space<vmem>>, %arg8: memref<1x256xf32, #tpu.memory_space<vmem>>, %arg9: memref<1x128xf32, #tpu.memory_space<vmem>>, %arg10: memref<1x128xf32, #tpu.memory_space<vmem>>, %arg11: memref<1x8x128xf32, #tpu.memory_space<vmem>>, %arg12: memref<1x1x128xf32, #tpu.memory_space<vmem>>, %arg13: memref<1x128xf32, #tpu.memory_space<vmem>>) attributes {dimension_semantics = [#tpu.dimension_semantics<parallel>, #tpu.dimension_semantics<arbitrary>], iteration_bounds = array<i64: 2, 2>, scalar_prefetch = 2 : i64, scratch_operands = 1 : i64, tpu.core_type = #tpu.core_type<tc>, window_params = [{transform_indices = @transform_0, window_bounds = array<i64: 1, 8, 128>}, {transform_indices = @transform_1, window_bounds = array<i64: 1, 8, 128>}, {transform_indices = @transform_2, window_bounds = array<i64: 1, 1, 128>}, {pipeline_mode = #tpu.pipeline_mode<synchronous>, transform_indices = @transform_3, window_bounds = array<i64: 128, 256>}, {pipeline_mode = #tpu.pipeline_mode<synchronous>, transform_indices = @transform_4, window_bounds = array<i64: 1, 256>}, {pipeline_mode = #tpu.pipeline_mode<synchronous>, transform_indices = @transform_5, window_bounds = array<i64: 1, 128>}, {pipeline_mode = #tpu.pipeline_mode<synchronous>, transform_indices = @transform_6, window_bounds = array<i64: 1, 128>}, {transform_indices = @transform_7, window_bounds = array<i64: 1, 8, 128>}, {transform_indices = @transform_8, window_bounds = array<i64: 1, 1, 128>}]} {
    %c0_i32 = arith.constant 0 : i32
    %0 = arith.cmpi eq, %arg1, %c0_i32 : i32
    %1 = arith.extui %0 : i1 to i32
    %c0_i32_0 = arith.constant 0 : i32
    %2 = arith.cmpi ne, %1, %c0_i32_0 : i32
    scf.if %2 {
      %c0_52 = arith.constant 0 : index
      %c0_53 = arith.constant 0 : index
      %c0_54 = arith.constant 0 : index
      %125 = vector.load %arg6[%c0_52, %c0_53, %c0_54] : memref<1x1x128xf32, #tpu.memory_space<vmem>>, vector<1x1x128xf32>
      %126 = vector.shape_cast %125 : vector<1x1x128xf32> to vector<1x128xf32>
      %c0_55 = arith.constant 0 : index
      %c0_56 = arith.constant 0 : index
      %127 = vector.load %arg13[%c0_55, %c0_56] : memref<1x128xf32, #tpu.memory_space<vmem>>, vector<1x128xf32>
      tpu.vector_store %arg13[%c0_55, %c0_56], %126 {strides = array<i32>} : memref<1x128xf32, #tpu.memory_space<vmem>>, vector<1x128xf32>,
    } else {
    }
    %c0 = arith.constant 0 : index
    %c0_1 = arith.constant 0 : index
    %c0_2 = arith.constant 0 : index
    %3 = vector.load %arg4[%c0, %c0_1, %c0_2] : memref<1x8x128xf32, #tpu.memory_space<vmem>>, vector<1x8x128xf32>
    %4 = vector.shape_cast %3 : vector<1x8x128xf32> to vector<8x128xf32>
    %5 = arith.truncf %4 : vector<8x128xf32> to vector<8x128xbf16>
    %c0_3 = arith.constant 0 : index
    %c0_4 = arith.constant 0 : index
    %6 = vector.load %arg7[%c0_3, %c0_4] : memref<128x256xbf16, #tpu.memory_space<vmem>>, vector<128x256xbf16>
    %cst = arith.constant dense<0.000000e+00> : vector<8x256xf32>
    %7 = tpu.matmul %5, %6, %cst {dimension_numbers = #tpu.dot_dimension_numbers<[1], [0], [0], [1], [0, 0, 1, 1], [], []>} : vector<8x128xbf16>, vector<128x256xbf16>, vector<8x256xf32> -> vector<8x256xf32>
    %c0_5 = arith.constant 0 : index
    %c0_6 = arith.constant 0 : index
    %8 = vector.load %arg8[%c0_5, %c0_6] : memref<1x256xf32, #tpu.memory_space<vmem>>, vector<1x256xf32>
    %9 = vector.broadcast %8 : vector<1x256xf32> to vector<8x256xf32>
    %10 = arith.addf %7, %9 : vector<8x256xf32>
    %11 = arith.negf %10 : vector<8x256xf32>
    %12 = math.exp %11 : vector<8x256xf32>
    %cst_7 = arith.constant 1.000000e+00 : f32
    %13 = vector.broadcast %cst_7 : f32 to vector<8x256xf32>
    %14 = arith.addf %13, %12 : vector<8x256xf32>
    %15 = arith.divf %13, %14 : vector<8x256xf32>
    %16 = vector.extract_strided_slice %15 {offsets = [0, 0], sizes = [8, 128], strides = [1, 1]} : vector<8x256xf32> to vector<8x128xf32>
    %17 = vector.extract_strided_slice %15 {offsets = [0, 128], sizes = [8, 128], strides = [1, 1]} : vector<8x256xf32> to vector<8x128xf32>
    %c0_8 = arith.constant 0 : index
    %c0_9 = arith.constant 0 : index
    %18 = vector.load %arg10[%c0_8, %c0_9] : memref<1x128xf32, #tpu.memory_space<vmem>>, vector<1x128xf32>
    %19 = vector.broadcast %18 : vector<1x128xf32> to vector<8x128xf32>
    %20 = arith.mulf %17, %19 : vector<8x128xf32>
    %21 = math.exp %20 : vector<8x128xf32>
    %22 = arith.mulf %21, %21 : vector<8x128xf32>
    %cst_10 = arith.constant 1.000000e+00 : f32
    %23 = vector.broadcast %cst_10 : f32 to vector<8x128xf32>
    %24 = arith.subf %23, %22 : vector<8x128xf32>
    %cst_11 = arith.constant 0.000000e+00 : f32
    %25 = vector.broadcast %cst_11 : f32 to vector<8x128xf32>
    %26 = arith.maximumf %24, %25 : vector<8x128xf32>
    %27 = math.sqrt %26 : vector<8x128xf32>
    %28 = tpu.iota {dimensions = array<i32: 0>} : vector<8x128xi32>
    %c8_i32 = arith.constant 8 : i32
    %29 = arith.muli %arg1, %c8_i32 : i32
    %30 = vector.broadcast %29 : i32 to vector<8x128xi32>
    %31 = arith.addi %28, %30 : vector<8x128xi32>
    %32 = arith.index_cast %arg0 : i32 to index
    %33 = memref.load %arg2[%32] : memref<2xi32, #tpu.memory_space<smem>>
    %c0_i32_12 = arith.constant 0 : i32
    %34 = arith.cmpi eq, %33, %c0_i32_12 : i32
    %35 = arith.index_cast %arg0 : i32 to index
    %36 = memref.load %arg3[%35] : memref<2xi32, #tpu.memory_space<smem>>
    %c0_i32_13 = arith.constant 0 : i32
    %37 = vector.broadcast %c0_i32_13 : i32 to vector<8x128xi32>
    %38 = arith.cmpi eq, %31, %37 : vector<8x128xi32>
    %39 = vector.broadcast %34 : i1 to vector<8x128xi1>
    %40 = arith.andi %38, %39 : vector<8x128xi1>
    %cst_14 = arith.constant 0.000000e+00 : f32
    %41 = vector.broadcast %cst_14 : f32 to vector<8x128xf32>
    %42 = arith.select %40, %41, %21 : vector<8x128xi1>, vector<8x128xf32>
    %cst_15 = arith.constant 1.000000e+00 : f32
    %43 = vector.broadcast %cst_15 : f32 to vector<8x128xf32>
    %44 = arith.select %40, %43, %27 : vector<8x128xi1>, vector<8x128xf32>
    %45 = arith.mulf %4, %16 : vector<8x128xf32>
    %46 = arith.mulf %45, %44 : vector<8x128xf32>
    %47 = vector.broadcast %36 : i32 to vector<8x128xi32>
    %48 = arith.cmpi slt, %31, %47 : vector<8x128xi32>
    %cst_16 = arith.constant 1.000000e+00 : f32
    %49 = vector.broadcast %cst_16 : f32 to vector<8x128xf32>
    %50 = arith.select %48, %42, %49 : vector<8x128xi1>, vector<8x128xf32>
    %cst_17 = arith.constant 0.000000e+00 : f32
    %51 = vector.broadcast %cst_17 : f32 to vector<8x128xf32>
    %52 = arith.select %48, %46, %51 : vector<8x128xi1>, vector<8x128xf32>
    %c1_i32 = arith.constant 1 : i32
    %53 = vector.broadcast %c1_i32 : i32 to vector<8x128xi32>
    %54 = arith.cmpi slt, %28, %53 : vector<8x128xi32>
    %c1_i32_18 = arith.constant 1 : i32
    %55 = tpu.dynamic_rotate %50 by %c1_i32_18 dim 0 : vector<8x128xf32>, i32 -> vector<8x128xf32>
    %cst_19 = arith.constant 1.000000e+00 : f32
    %56 = vector.broadcast %cst_19 : f32 to vector<8x128xf32>
    %57 = arith.select %54, %56, %55 : vector<8x128xi1>, vector<8x128xf32>
    %c1_i32_20 = arith.constant 1 : i32
    %58 = vector.broadcast %c1_i32_20 : i32 to vector<8x128xi32>
    %59 = arith.cmpi slt, %28, %58 : vector<8x128xi32>
    %c1_i32_21 = arith.constant 1 : i32
    %60 = tpu.dynamic_rotate %52 by %c1_i32_21 dim 0 : vector<8x128xf32>, i32 -> vector<8x128xf32>
    %cst_22 = arith.constant 0.000000e+00 : f32
    %61 = vector.broadcast %cst_22 : f32 to vector<8x128xf32>
    %62 = arith.select %59, %61, %60 : vector<8x128xi1>, vector<8x128xf32>
    %63 = arith.mulf %50, %62 : vector<8x128xf32>
    %64 = arith.addf %63, %52 : vector<8x128xf32>
    %65 = arith.mulf %50, %57 : vector<8x128xf32>
    %c2_i32 = arith.constant 2 : i32
    %66 = vector.broadcast %c2_i32 : i32 to vector<8x128xi32>
    %67 = arith.cmpi slt, %28, %66 : vector<8x128xi32>
    %c2_i32_23 = arith.constant 2 : i32
    %68 = tpu.dynamic_rotate %65 by %c2_i32_23 dim 0 : vector<8x128xf32>, i32 -> vector<8x128xf32>
    %cst_24 = arith.constant 1.000000e+00 : f32
    %69 = vector.broadcast %cst_24 : f32 to vector<8x128xf32>
    %70 = arith.select %67, %69, %68 : vector<8x128xi1>, vector<8x128xf32>
    %c2_i32_25 = arith.constant 2 : i32
    %71 = vector.broadcast %c2_i32_25 : i32 to vector<8x128xi32>
    %72 = arith.cmpi slt, %28, %71 : vector<8x128xi32>
    %c2_i32_26 = arith.constant 2 : i32
    %73 = tpu.dynamic_rotate %64 by %c2_i32_26 dim 0 : vector<8x128xf32>, i32 -> vector<8x128xf32>
    %cst_27 = arith.constant 0.000000e+00 : f32
    %74 = vector.broadcast %cst_27 : f32 to vector<8x128xf32>
    %75 = arith.select %72, %74, %73 : vector<8x128xi1>, vector<8x128xf32>
    %76 = arith.mulf %65, %75 : vector<8x128xf32>
    %77 = arith.addf %76, %64 : vector<8x128xf32>
    %78 = arith.mulf %65, %70 : vector<8x128xf32>
    %c4_i32 = arith.constant 4 : i32
    %79 = vector.broadcast %c4_i32 : i32 to vector<8x128xi32>
    %80 = arith.cmpi slt, %28, %79 : vector<8x128xi32>
    %c4_i32_28 = arith.constant 4 : i32
    %81 = tpu.dynamic_rotate %78 by %c4_i32_28 dim 0 : vector<8x128xf32>, i32 -> vector<8x128xf32>
    %cst_29 = arith.constant 1.000000e+00 : f32
    %82 = vector.broadcast %cst_29 : f32 to vector<8x128xf32>
    %83 = arith.select %80, %82, %81 : vector<8x128xi1>, vector<8x128xf32>
    %c4_i32_30 = arith.constant 4 : i32
    %84 = vector.broadcast %c4_i32_30 : i32 to vector<8x128xi32>
    %85 = arith.cmpi slt, %28, %84 : vector<8x128xi32>
    %c4_i32_31 = arith.constant 4 : i32
    %86 = tpu.dynamic_rotate %77 by %c4_i32_31 dim 0 : vector<8x128xf32>, i32 -> vector<8x128xf32>
    %cst_32 = arith.constant 0.000000e+00 : f32
    %87 = vector.broadcast %cst_32 : f32 to vector<8x128xf32>
    %88 = arith.select %85, %87, %86 : vector<8x128xi1>, vector<8x128xf32>
    %89 = arith.mulf %78, %88 : vector<8x128xf32>
    %90 = arith.addf %89, %77 : vector<8x128xf32>
    %91 = arith.mulf %78, %83 : vector<8x128xf32>
    %c0_33 = arith.constant 0 : index
    %c0_34 = arith.constant 0 : index
    %92 = vector.load %arg13[%c0_33, %c0_34] : memref<1x128xf32, #tpu.memory_space<vmem>>, vector<1x128xf32>
    %93 = vector.broadcast %92 : vector<1x128xf32> to vector<8x128xf32>
    %94 = arith.mulf %91, %93 : vector<8x128xf32>
    %95 = arith.addf %94, %90 : vector<8x128xf32>
    %c0_35 = arith.constant 0 : index
    %c0_36 = arith.constant 0 : index
    %c0_37 = arith.constant 0 : index
    %96 = vector.load %arg5[%c0_35, %c0_36, %c0_37] : memref<1x8x128xf32, #tpu.memory_space<vmem>>, vector<1x8x128xf32>
    %97 = vector.shape_cast %96 : vector<1x8x128xf32> to vector<8x128xf32>
    %c0_38 = arith.constant 0 : index
    %c0_39 = arith.constant 0 : index
    %98 = vector.load %arg9[%c0_38, %c0_39] : memref<1x128xf32, #tpu.memory_space<vmem>>, vector<1x128xf32>
    %99 = vector.broadcast %98 : vector<1x128xf32> to vector<8x128xf32>
    %100 = arith.addf %97, %99 : vector<8x128xf32>
    %101 = arith.mulf %100, %100 : vector<8x128xf32>
    %102 = arith.mulf %100, %101 : vector<8x128xf32>
    %cst_40 = arith.constant 4.471500e-02 : f32
    %103 = vector.broadcast %cst_40 : f32 to vector<8x128xf32>
    %104 = arith.mulf %103, %102 : vector<8x128xf32>
    %105 = arith.addf %100, %104 : vector<8x128xf32>
    %cst_41 = arith.constant 0.797884583 : f32
    %106 = vector.broadcast %cst_41 : f32 to vector<8x128xf32>
    %107 = arith.mulf %106, %105 : vector<8x128xf32>
    %108 = math.tanh %107 : vector<8x128xf32>
    %cst_42 = arith.constant 1.000000e+00 : f32
    %109 = vector.broadcast %cst_42 : f32 to vector<8x128xf32>
    %110 = arith.addf %109, %108 : vector<8x128xf32>
    %cst_43 = arith.constant 5.000000e-01 : f32
    %111 = vector.broadcast %cst_43 : f32 to vector<8x128xf32>
    %112 = arith.mulf %111, %110 : vector<8x128xf32>
    %113 = arith.mulf %100, %112 : vector<8x128xf32>
    %114 = arith.mulf %95, %113 : vector<8x128xf32>
    %cst_44 = arith.constant 0.000000e+00 : f32
    %115 = vector.broadcast %cst_44 : f32 to vector<8x128xf32>
    %116 = arith.select %48, %114, %115 : vector<8x128xi1>, vector<8x128xf32>
    %c0_45 = arith.constant 0 : index
    %c0_46 = arith.constant 0 : index
    %c0_47 = arith.constant 0 : index
    %117 = vector.load %arg11[%c0_45, %c0_46, %c0_47] : memref<1x8x128xf32, #tpu.memory_space<vmem>>, vector<1x8x128xf32>
    %118 = vector.shape_cast %117 : vector<1x8x128xf32> to vector<8x128xf32>
    %119 = vector.shape_cast %116 : vector<8x128xf32> to vector<1x8x128xf32>
    tpu.vector_store %arg11[%c0_45, %c0_46, %c0_47], %119 {strides = array<i32>} : memref<1x8x128xf32, #tpu.memory_space<vmem>>, vector<1x8x128xf32>,
    %120 = vector.extract_strided_slice %95 {offsets = [7, 0], sizes = [1, 128], strides = [1, 1]} : vector<8x128xf32> to vector<1x128xf32>
    %c0_48 = arith.constant 0 : index
    %c0_49 = arith.constant 0 : index
    %121 = vector.load %arg13[%c0_48, %c0_49] : memref<1x128xf32, #tpu.memory_space<vmem>>, vector<1x128xf32>
    tpu.vector_store %arg13[%c0_48, %c0_49], %120 {strides = array<i32>} : memref<1x128xf32, #tpu.memory_space<vmem>>, vector<1x128xf32>,
    %c1_i32_50 = arith.constant 1 : i32
    %122 = arith.cmpi eq, %arg1, %c1_i32_50 : i32
    %123 = arith.extui %122 : i1 to i32
    %c0_i32_51 = arith.constant 0 : i32
    %124 = arith.cmpi ne, %123, %c0_i32_51 : i32
    scf.if %124 {
      %c0_52 = arith.constant 0 : index
      %c0_53 = arith.constant 0 : index
      %c0_54 = arith.constant 0 : index
      %125 = vector.load %arg12[%c0_52, %c0_53, %c0_54] : memref<1x1x128xf32, #tpu.memory_space<vmem>>, vector<1x1x128xf32>
      %126 = vector.shape_cast %125 : vector<1x1x128xf32> to vector<1x128xf32>
      %127 = vector.shape_cast %120 : vector<1x128xf32> to vector<1x1x128xf32>
      tpu.vector_store %arg12[%c0_52, %c0_53, %c0_54], %127 {strides = array<i32>} : memref<1x1x128xf32, #tpu.memory_space<vmem>>, vector<1x1x128xf32>,
    } else {
    }
    return
  }
  func.func @transform_0(%arg0: i32, %arg1: i32, %arg2: memref<2xi32, #tpu.memory_space<smem>>, %arg3: memref<2xi32, #tpu.memory_space<smem>>) -> (i32, i32, i32) {
    %c0_i32 = arith.constant 0 : i32
    %c0_i32_0 = arith.constant 0 : i32
    return %arg0, %arg1, %c0_i32 : i32, i32, i32
  }
  func.func @transform_1(%arg0: i32, %arg1: i32, %arg2: memref<2xi32, #tpu.memory_space<smem>>, %arg3: memref<2xi32, #tpu.memory_space<smem>>) -> (i32, i32, i32) {
    %c0_i32 = arith.constant 0 : i32
    %c0_i32_0 = arith.constant 0 : i32
    return %arg0, %arg1, %c0_i32 : i32, i32, i32
  }
  func.func @transform_2(%arg0: i32, %arg1: i32, %arg2: memref<2xi32, #tpu.memory_space<smem>>, %arg3: memref<2xi32, #tpu.memory_space<smem>>) -> (i32, i32, i32) {
    %c0_i32 = arith.constant 0 : i32
    %c0_i32_0 = arith.constant 0 : i32
    %c0_i32_1 = arith.constant 0 : i32
    return %arg0, %c0_i32, %c0_i32_0 : i32, i32, i32
  }
  func.func @transform_3(%arg0: i32, %arg1: i32, %arg2: memref<2xi32, #tpu.memory_space<smem>>, %arg3: memref<2xi32, #tpu.memory_space<smem>>) -> (i32, i32) {
    %c0_i32 = arith.constant 0 : i32
    %c0_i32_0 = arith.constant 0 : i32
    %c0_i32_1 = arith.constant 0 : i32
    return %c0_i32, %c0_i32_0 : i32, i32
  }
  func.func @transform_4(%arg0: i32, %arg1: i32, %arg2: memref<2xi32, #tpu.memory_space<smem>>, %arg3: memref<2xi32, #tpu.memory_space<smem>>) -> (i32, i32) {
    %c0_i32 = arith.constant 0 : i32
    %c0_i32_0 = arith.constant 0 : i32
    %c0_i32_1 = arith.constant 0 : i32
    return %c0_i32, %c0_i32_0 : i32, i32
  }
  func.func @transform_5(%arg0: i32, %arg1: i32, %arg2: memref<2xi32, #tpu.memory_space<smem>>, %arg3: memref<2xi32, #tpu.memory_space<smem>>) -> (i32, i32) {
    %c0_i32 = arith.constant 0 : i32
    %c0_i32_0 = arith.constant 0 : i32
    %c0_i32_1 = arith.constant 0 : i32
    return %c0_i32, %c0_i32_0 : i32, i32
  }
  func.func @transform_6(%arg0: i32, %arg1: i32, %arg2: memref<2xi32, #tpu.memory_space<smem>>, %arg3: memref<2xi32, #tpu.memory_space<smem>>) -> (i32, i32) {
    %c0_i32 = arith.constant 0 : i32
    %c0_i32_0 = arith.constant 0 : i32
    %c0_i32_1 = arith.constant 0 : i32
    return %c0_i32, %c0_i32_0 : i32, i32
  }
  func.func @transform_7(%arg0: i32, %arg1: i32, %arg2: memref<2xi32, #tpu.memory_space<smem>>, %arg3: memref<2xi32, #tpu.memory_space<smem>>) -> (i32, i32, i32) {
    %c0_i32 = arith.constant 0 : i32
    %c0_i32_0 = arith.constant 0 : i32
    return %arg0, %arg1, %c0_i32 : i32, i32, i32
  }
  func.func @transform_8(%arg0: i32, %arg1: i32, %arg2: memref<2xi32, #tpu.memory_space<smem>>, %arg3: memref<2xi32, #tpu.memory_space<smem>>) -> (i32, i32, i32) {
    %c0_i32 = arith.constant 0 : i32
    %c0_i32_0 = arith.constant 0 : i32
    %c0_i32_1 = arith.constant 0 : i32
    return %arg0, %c0_i32, %c0_i32_0 : i32, i32, i32
  }
}

</mosaic_0001>

<bundles_post_ra>
// kernel: rg_lru_forward.1
= control target key start
LH: loop header
LB: loop body
LE: loop exit
PB: predicated region body
PF: predicated region fallthrough
CT: control target
= control target key end

     0   :  { %s1599_s0 = inlined_call_operand.vmem [shape: s32[2], index: 0, kind: input, shape index: {}]   ;;  %s1600_s2 = inlined_call_operand.vmem [shape: f32[2,16,128], index: 2, kind: input, shape index: {}]   ;;  %s1601_s3 = inlined_call_operand.vmem [shape: f32[2,16,128], index: 3, kind: input, shape index: {}]   ;;  %s1602_s4 = inlined_call_operand.vmem [shape: f32[2,1,128], index: 4, kind: input, shape index: {}]   ;;  %s1603_s5 = inlined_call_operand.vmem [shape: bf16[128,256], index: 5, kind: input, shape index: {}]   ;;  %s1604_s6 = inlined_call_operand.vmem [shape: f32[1,256], index: 6, kind: input, shape index: {}]   ;;  %s1605_s7 = inlined_call_operand.vmem [shape: f32[1,128], index: 7, kind: input, shape index: {}]   ;;  %s1606_s8 = inlined_call_operand.vmem [shape: f32[1,128], index: 8, kind: input, shape index: {}]   ;;  %s1607_s9 = inlined_call_operand.hbm [shape: f32[2,16,128], index: 9, kind: output, shape index: {0}]   ;;  %s1608_s10 = inlined_call_operand.hbm [shape: f32[2,1,128], index: 10, kind: output, shape index: {1}]   ;;  %s1609_s1 = inlined_call_operand.vmem [shape: s32[2], index: 1, kind: input, shape index: {}]  }
   0x1   :  { %1626 = sst [smem:[#allocation27_spill]] %s1608_s10  ;;  %s16_s15 = sshll.u32 %s1599_s0, 4  ;;  %s17_s15 = int_to_ptr.vmem [resolvable:$true] %s16_s15 }
   0x2   :  { %s20_s18 = sshll.u32 %s1609_s1, 4  ;;  %s1014_s19 = scalar_lea.vmem %s17_s15, 16  ;;  %s21_s18 = int_to_ptr.vmem [resolvable:$true] %s20_s18 }
   0x3   :  { %p1015_p0 = scmp.ne.s32.totalorder %s17_s15, %s1014_s19  ;;  %p1019_p1 = scmp.lt.s32.totalorder %s17_s15, %s17_s15 }
   0x4   :  { %p1020_p2 = scmp.lt.s32.totalorder %s1014_s19, %s1014_s19 }
   0x6   :  { %p1021_p3 = por %p1020_p2, %p1019_p1 }
   0x8   :  { %p1022_p4 = pnand %p1021_p3, %p1015_p0 }
   0xa   :  { %1025 = shalt.err (!%p1022_p4)  }
   0xb   :  { %s1192_s20 = smov [#allocation4]   ;;  %s1026_s21 = scalar_lea.vmem %s21_s18, 16 }
   0xc   :  { %19 = dma.vmem_to_smem %s17_s15, 16, %s1192_s20, [#allocation3] }
   0xd   :  { %p1027_p5 = scmp.ne.s32.totalorder %s21_s18, %s1026_s21  ;;  %p1031_p6 = scmp.lt.s32.totalorder %s21_s18, %s21_s18 }
   0xe   :  { %p1032_p7 = scmp.lt.s32.totalorder %s1026_s21, %s1026_s21 }
  0x10   :  { %p1033_p8 = por %p1032_p7, %p1031_p6 }
  0x12   :  { %p1034_p9 = pnand %p1033_p8, %p1027_p5 }
  0x14   :  { %1037 = shalt.err (!%p1034_p9)  }
  0x15   :  { %s1193_s0 = smov [#allocation5]  }
  0x16   :  { %23 = dma.vmem_to_smem %s21_s18, 16, %s1193_s0, [#allocation3] }
  0x17   :  { %1138 = dma.done.wait [#allocation3], 32 }
  0x18   :  { %1139 = vsyncadd [#allocation3], 4294967264 }
  0x19   :  { %25 = sfence }
  0x1a   :  { %26 = vsyncpa [#allocation7], 0 }
  0x1b   :  { %28 = vsyncpa [#allocation7 + $0x1], 0 }
  0x1c   :  { %29 = vsyncpa [#allocation9], 0 }
  0x1d   :  { %31 = vsyncpa [#allocation9 + $0x1], 0  ;;  %s1258_s1 = smov 0   ;;  %s1260_s22 = smov 0  }
  0x1e   :  { %s1262_s23 = smov 0   ;;  %s1264_s24 = smov 0  }
  0x1f   :  { %s1266_s25 = smov 0   ;;  %s1268_s26 = smov 0  }
  0x20   :  { %s1270_s27 = smov 0   ;;  %s1272_s28 = smov 0  }
  0x21   :  { %s1274_s29 = smov 0   ;;  %s1276_s30 = smov 0  }
  0x22   :  { %s1278_s11 = smov 0  }
  0x23 LB: > { %1627 = sst [smem:[#allocation13_spill]] %s1150_s1  ;;  %s833_s12 = sadd.s32 4294967295, %s1190_s11   ;;  %s1190_s11 = sphi %s1278_s11, %s37_s11   ;;  %s1186_s30 = sphi %s1276_s30, %s1670_s30   ;;  %s1182_s29 = sphi %s1274_s29, %s1669_s29   ;;  %s1178_s28 = sphi %s1272_s28, %s1668_s28   ;;  %s1174_s27 = sphi %s1270_s27, %s1676_s27   ;;  %s1170_s26 = sphi %s1268_s26, %s1666_s26   ;;  %s1166_s25 = sphi %s1266_s25, %s1675_s25   ;;  %s1162_s24 = sphi %s1264_s24, %s1674_s24   ;;  %s1158_s23 = sphi %s1262_s23, %s1673_s23   ;;  %s1154_s22 = sphi %s1260_s22, %s1672_s22   ;;  %s1150_s1 = sphi %s1258_s1, %s1671_s1  }
  0x24   : > { %1628 = sst [smem:[#allocation14_spill]] %s1158_s23  ;;  %s834_s13 = sadd.s32 4294967294, %s1190_s11  }
  0x25   : > { %1629 = sst [smem:[#allocation15_spill]] %s1162_s24  ;;  %s46_s14 = sadd.s32 1, %s1182_s29 }
  0x26   : > { %1630 = sst [smem:[#allocation16_spill]] %s1170_s26  ;;  %s49_s15 = sadd.s32 1, %s1186_s30 }
  0x27   : > { %1631 = sst [smem:[#allocation17_spill]] %s1182_s29  ;;  %p47_p10 = scmp.ge.s32.totalorder %s46_s14, 2 }
  0x28   : > { %1632 = sst [smem:[#allocation18_spill]] %s1186_s30  ;;  %s224_s16 = sadd.s32 1, %s1170_s26 }
  0x29   : > { %1633 = sst [smem:[#allocation19_spill]] %s1190_s11  ;;  %p234_p11 = scmp.ne.s32.totalorder %s1170_s26, %s1166_s25 }
  0x2a   : > { %p1320_p12 = scmp.eq.s32.totalorder %s833_s12, 3  ;;  %s1678_s14 = smov (%p47_p10, %s46_s14), 0 }
  0x2b   : > { %1635 = sst [smem:[#allocation20_spill]] %s1678_s14  ;;  %s1680_s15 = smov (!%p47_p10, %s49_s15), %s1186_s30 }
  0x2c   : > { %s220_s18 = ssub.s32 %s1182_s29, %s1678_s14  ;;  %p1331_p13 = por %p1320_p12, %p234_p11 }
  0x2d   : > { %p51_p0 = scmp.ge.s32.totalorder %s1680_s15, 2  ;;  %p240_p1 = scmp.ne.s32.totalorder %s1166_s25, %s1162_s24 }
  0x2e   : > { %p1337_p2 = scmp.eq.s32.totalorder %s834_s13, 3  ;;  %s250_s21 = sadd.s32 1, %s1158_s23 }
  0x2f   : > { %s1682_s15 = smov (%p51_p0, %s1680_s15), 0  ;;  %p260_p4 = scmp.ne.s32.totalorder %s1158_s23, %s1154_s22 }
  0x30   : > { %1638 = sst [smem:[#allocation21_spill]] %s1682_s15  ;;  %p1346_p3 = por %p1337_p2, %p240_p1 }
  0x31   : > { %s219_s12 = ssub.s32 %s1186_s30, %s1682_s15  ;;  %p266_p5 = scmp.ne.s32.totalorder %s1154_s22, %s1150_s1 }
  0x32   : > { %s1639_s0 = scalar_select %p1346_p3, 1, 0 }
  0x33   : > { %s221_s14 = sor.u32 %s220_s18, %s219_s12  ;;  %p248_p6 = scmp.eq.s32.totalorder %s219_s12, 0 }
  0x34   : > { %1640 = sst [smem:[#allocation22_spill]] %s1639_s0  ;;  %p222_p7 = scmp.eq.s32.totalorder %s221_s14, 0 }
  0x35   : > { %p1358_p8 = por %p260_p4, %p1320_p12  ;;  %p1370_p9 = por %p266_p5, %p1337_p2 }
  0x36   : > { %s1363_s29 = scalar_select %p248_p6, %s1158_s23, %s250_s21  }
  0x37   : > { %s1641_s13 = scalar_select %p1358_p8, 1, 0 }
  0x38   : > { %1643 = sst [smem:[#allocation24_spill]] %s1363_s29  ;;  %p837_p10 = scmp.ge.s32.totalorder %s1190_s11, 1 }
  0x39   : > { %1642 = sst [smem:[#allocation23_spill]] %s1641_s13  ;;  %p325_p11 = scmp.lt.s32.totalorder %s1190_s11, 5 }
  0x3a   : > { %s1366_s24 = scalar_select %p222_p7, %s1170_s26, %s224_s16  }
  0x3b   : > { %s1645_s10 = scalar_select %p1370_p9, 1, 0 }
  0x3c   : > { %1644 = sst [smem:[#allocation25_spill]] %s1366_s24  ;;  %p326_p0 = pnand %p837_p10, %p325_p11 }
  0x3d   : > { %1646 = sst [smem:[#allocation26_spill]] %s1645_s10  ;;  %s1619_s14 = sand.u32 (!%p326_p0), 1, %s1166_s25  }
  0x3e   : > { %329 = sbr.rel (%p326_p0) target bundleno = 471 (0x1d7), region = 48  ;;  %s1380_s17 = sshll.u32 (!%p326_p0), %s1619_s14, 3 }
  0x3f   : > { %p377_p12 = scmp.lt.s32.totalorder (!%p326_p0), %s1178_s28, 1  ;;  %p379_p1 = scmp.lt.s32.totalorder (!%p326_p0), %s1174_s27, 1 }
  0x40   : > { %s370_s0 = scalar_lea.vmem (!%p326_p0), [#allocation6], %s1380_s17  ;;  %s1647_s11 = sand.u32 (!%p326_p0), 1, %s1154_s22  }
  0x41   : > { %s1402_s13 = scalar_lea.vmem (!%p326_p0), [#allocation8], %s1647_s11  ;;  %p843_p2 = scmp.ne.s32.totalorder (!%p326_p0), %s1174_s27, 0 }
  0x45   : > { %s378_s18 = scalar_select %p377_p12, %s1178_s28, 1 }
  0x46   : > { %s380_s20 = scalar_select %p379_p1, %s1174_s27, 1 }
  0x47   : > { %s839_s21 = sshll.u32 %s378_s18, 1  ;;  %s395_s30 = scalar_lea.vmem %s1602_s4, %s378_s18 }
  0x48   : > { %s382_s24 = sadd.s32 %s839_s21, %s380_s20  ;;  %400 = sbr.rel (%p843_p2) target bundleno = 79 (0x4f), region = 52  ;;  %v401_v0 = vld [vmem:[%s395_s30] sm:$0x1] (!%p843_p2) }
  0x49   : > { %s840_s26 = sshll.u32 %s382_s24, 3  ;;  %402 = vst [vmem:[#allocation2] sm:$0x1] (!%p843_p2), %v401_v0 }
  0x4a   : > { %s1392_s10 = scalar_lea.vmem %s1600_s2, %s840_s26  ;;  %s1397_s1 = scalar_lea.vmem %s1601_s3, %s840_s26 }
  0x4f PF: > { %v976_v1 = vld [vmem:[%s1603_s5 + $0x4] ss:$8 sps:$4 sm:$0xff]   ;;  %v978_v2 = vld [vmem:[%s1603_s5] ss:$8 sps:$4 sm:$0xff]   ;;  %v1194_v3 = vmov 0   ;;  %v423_v20 = vlaneseq  ;;  %s863_s20 = sshll.u32 %s1174_s27, 3 }
  0x50   : > { %545 = vmatprep.mubr.bf16.mxu0 %v1194_v3  ;;  %513 = vmatprep.subr.bf16.mxu0 %v976_v1  ;;  %v979_v4 = vld [vmem:[%s1603_s5 + $0x14] ss:$8 sps:$4 sm:$0xff]   ;;  %v981_v5 = vld [vmem:[%s1603_s5 + $0x10] ss:$8 sps:$4 sm:$0xff]   ;;  %v982_v6 = vld [vmem:[%s1603_s5 + $0x24] ss:$8 sps:$4 sm:$0xff]   ;;  %v589_v41 = vstv %s863_s20 }
  0x51   : > { %514 = vmatpush1.bf16.msra.mxu0 %v978_v2  ;;  %v984_v7 = vld [vmem:[%s1603_s5 + $0x20] ss:$8 sps:$4 sm:$0xff]   ;;  %v985_v8 = vld [vmem:[%s1603_s5 + $0x34] ss:$8 sps:$4 sm:$0xff]   ;;  %v987_v9 = vld [vmem:[%s1603_s5 + $0x30] ss:$8 sps:$4 sm:$0xff]  }
  0x52   : > { %515 = vmatprep.subr.bf16.mxu0 %v979_v4  ;;  %v988_v10 = vld [vmem:[%s1603_s5 + $0x44] ss:$8 sps:$4 sm:$0xff]   ;;  %v990_v11 = vld [vmem:[%s1603_s5 + $0x40] ss:$8 sps:$4 sm:$0xff]   ;;  %v991_v12 = vld [vmem:[%s1603_s5 + $0x54] ss:$8 sps:$4 sm:$0xff]  }
  0x53   : > { %v993_v13 = vld [vmem:[%s1603_s5 + $0x50] ss:$8 sps:$4 sm:$0xff]   ;;  %v994_v14 = vld [vmem:[%s1603_s5 + $0x64] ss:$8 sps:$4 sm:$0xff]   ;;  %v996_v15 = vld [vmem:[%s1603_s5 + $0x60] ss:$8 sps:$4 sm:$0xff]  }
  0x54   : > { %v997_v16 = vld [vmem:[%s1603_s5 + $0x74] ss:$8 sps:$4 sm:$0xff]   ;;  %v999_v17 = vld [vmem:[%s1603_s5 + $0x70] ss:$8 sps:$4 sm:$0xff]   ;;  %v1454_v18 = vld [vmem:[%s1392_s10] sm:$0xff]  ;;  %v1458_v21 = vshrl.u32 %v423_v20, 7 }
  0x55   : > { %516 = vmatpush1.bf16.msra.mxu0 %v981_v5  ;;  %v404_v19 = vpack.c.bf16 %v1454_v18, %v1454_v18  ;;  %v421_v23 = vld [vmem:[%s1604_s6] sm:$0x3]  ;;  %s591_s10 = sld [smem:[#allocation4 + %s1178_s28]]  ;;  %p866_p5 = scmp.ne.s32.totalorder %s1174_s27, 1 }
  0x56   : > { %517 = vmatprep.subr.bf16.mxu0 %v982_v6  ;;  %v429_v22 = vsub.s32 1, %v1458_v21  ;;  %v425_v33 = vsub.s32 0, %v1458_v21  ;;  %v862_v36 = vld [vmem:[%s1606_s8] ss:$0 sm:$0xff]  ;;  %s593_s12 = sld [smem:[#allocation5 + %s1178_s28]]  ;;  %v590_v42 = vadd.s32 %v589_v41, %v1458_v21  ;;  %vm607_vm4 = vcmp.lt.s32.totalorder %v1458_v21, 1 }
  0x57   : > { %v640_v44 = vld [vmem:[%s1397_s1] sm:$0xff]  ;;  %vm615_vm7 = vcmp.lt.s32.totalorder %v1458_v21, 2  ;;  %vm623_vm8 = vcmp.lt.s32.totalorder %v1458_v21, 4 }
  0x58   : > { %v430_v24 = vrot.slane %v421_v23, %v429_v22  ;;  %v426_v34 = vrot.slane %v421_v23, %v425_v33  ;;  %v865_v45 = vld [vmem:[%s1605_s7] ss:$0 sm:$0xff]  ;;  %vm594_vm0 = vcmp.eq.s32.totalorder %v590_v42, 0 }
  0x59   : > { %518 = vmatpush1.bf16.msra.mxu0 %v984_v7  ;;  %v648_v47 = vadd.f32 %v865_v45, %v640_v44 }
  0x5a   : > { %519 = vmatprep.subr.bf16.mxu0 %v985_v8 }
  0x5b   : > { %p592_p4 = scmp.eq.s32.totalorder %s591_s10, 0  ;;  %v649_v54 = vmul.f32 %v648_v47, %v648_v47 }
  0x5c   : > { %v603_v52 = vstv %s593_s12 }
  0x5d   : > { %520 = vmatpush1.bf16.msra.mxu0 %v987_v9  ;;  %s595_s21 = scalar_select %p592_p4, 1, 0  ;;  %vm1482_vm3 = vcmp.lt.s32.totalorder %v590_v42, %v603_v52  ;;  %v650_v58 = vmul.f32 %v649_v54, %v648_v47 }
  0x5e   : > { %521 = vmatprep.subr.bf16.mxu0 %v988_v10 }
  0x5f   : > { %v596_v43 = vstv %s595_s21  ;;  %v651_v61 = vmul.f32 0.044715, %v650_v58 }
  0x60   : > { %vm597_vm1 = vcmp.eq.s32.totalorder %v596_v43, 1 }
  0x61   : > { %522 = vmatpush1.bf16.msra.mxu0 %v990_v11  ;;  %vm1476_vm2 = vmand %vm594_vm0, %vm597_vm1  ;;  %v652_v63 = vadd.f32 %v651_v61, %v648_v47 }
  0x62   : > { %523 = vmatprep.subr.bf16.mxu0 %v991_v12 }
  0x63   : > { %v653_v6 = vmul.f32 0.7978846, %v652_v63 }
  0x65   : > { %524 = vmatpush1.bf16.msra.mxu0 %v993_v13 }
  0x66   : > { %525 = vmatprep.subr.bf16.mxu0 %v994_v14 }
  0x69   : > { %526 = vmatpush1.bf16.msra.mxu0 %v996_v15 }
  0x6a   : > { %527 = vmatprep.subr.bf16.mxu0 %v997_v16 }
  0x6d   : > { %528 = vmatpush1.bf16.msra.mxu0 %v999_v17 }
  0x70   : > { %546 = vmatmul.mubr.bf16.vlgmr.msra.gmra.mrb[0].mxu0 %v404_v19 }
 0x143   : > { %v547_v25 = vpop.f32.mrb[0].mxu0 }
 0x144   : > { %v549_v26 = vpop.f32.mrb[1].mxu0  ;;  %v548_v35 = vadd.f32 %v547_v25, %v426_v34 }
 0x145   : > { %v550_v27 = vadd.f32 %v549_v26, %v430_v24  ;;  %v551_v28 = vpop.f32.mrb[2].mxu0 }
 0x146   : > { %v552_v29 = vpop.f32.mrb[3].mxu0  ;;  %v860_v39 = vmul.f32 -1.442695, %v548_v35 }
 0x147   : > { %v861_v30 = vmul.f32 -1.442695, %v550_v27 }
 0x149   : > { %1000 = vpow2.f32 %v861_v30 }
 0x153   : > { %v1001_v31 = vpop.eup %1000 }
 0x154   : > { %v561_v32 = vadd.f32 1.0, %v1001_v31 }
 0x156   : > { %1002 = vrcp.f32 %v561_v32  ;;  %v864_v32 = vld [vmem:[#allocation2] ss:$0 sm:$0xff] }
 0x160   : > { %v1003_v37 = vpop.eup %1002 }
 0x161   : > { %v573_v38 = vmul.f32 %v1003_v37, %v862_v36 }
 0x163   : > { %v574_v40 = vmul.f32 1.442695, %v573_v38 }
 0x165   : > { %1004 = vpow2.f32 %v574_v40 }
 0x166   : > { %1006 = vpow2.f32 %v860_v39 }
 0x16f   : > { %v1005_v46 = vpop.eup %1004 }
 0x170   : > { %v1007_v48 = vpop.eup %1006  ;;  %v576_v49 = vmul.f32 %v1005_v46, %v1005_v46  ;;  %v599_v56 = vsel %vm1476_vm2, 0.0, %v1005_v46 }
 0x171   : > { %v560_v53 = vadd.f32 1.0, %v1007_v48  ;;  %v605_v59 = vsel %vm1482_vm3, %v599_v56, 1.0 }
 0x172   : > { %v577_v50 = vsub.f32 1.0, %v576_v49  ;;  %v608_v60 = vrot.slane %v605_v59, 7 }
 0x174   : > { %v578_v55 = vmax.f32 %v577_v50, 0.0  ;;  %v609_v62 = vsel %vm607_vm4, 1.0, %v608_v60 }
 0x175   : > { %v614_v4 = vmul.f32 %v609_v62, %v605_v59 }
 0x176   : > { %1008 = vrsqrt.f32 %v578_v55  ;;  %vm581_vm5 = vcmp.eq.f32.partialorder %v578_v55, inf  ;;  %v584_v3 = vand.u32 2147483648, %v578_v55  ;;  %vm583_vm6 = vcmp.eq.f32.partialorder %v578_v55, 0.0 }
 0x177   : > { %1010 = vrcp.f32 %v560_v53  ;;  %v616_v11 = vrot.slane %v614_v4, 6 }
 0x178   : > { %1012 = vtanh.f32 %v653_v6 }
 0x179   : > { %v617_v14 = vsel %vm615_vm7, 1.0, %v616_v11 }
 0x17a   : > { %v622_v17 = vmul.f32 %v617_v14, %v614_v4 }
 0x17c   : > { %v624_v22 = vrot.slane %v622_v17, 4 }
 0x17e   : > { %v625_v27 = vsel %vm623_vm8, 1.0, %v624_v22 }
 0x17f   : > { %v630_v29 = vmul.f32 %v625_v27, %v622_v17 }
 0x180   : > { %v1009_v0 = vpop.eup %1008 }
 0x181   : > { %v1011_v1 = vpop.eup %1010  ;;  %v580_v2 = vmul.f32 %v1009_v0, %v578_v55  ;;  %v638_v35 = vmul.f32 %v864_v32, %v630_v29 }
 0x182   : > { %v601_v7 = vmul.f32 %v1011_v1, %v1454_v18  ;;  %v1013_v20 = vpop.eup %1012 }
 0x183   : > { %v582_v5 = vsel %vm581_vm5, %v578_v55, %v580_v2  ;;  %v655_v25 = vadd.f32 1.0, %v1013_v20 }
 0x184   : > { %v585_v8 = vsel %vm583_vm6, %v584_v3, %v582_v5 }
 0x185   : > { %v600_v9 = vsel %vm1476_vm2, 1.0, %v585_v8  ;;  %v656_v30 = vmul.f32 0.5, %v655_v25 }
 0x186   : > { %v602_v10 = vmul.f32 %v601_v7, %v600_v9 }
 0x187   : > { %v657_v36 = vmul.f32 %v656_v30, %v648_v47 }
 0x188   : > { %v606_v12 = vsel %vm1482_vm3, %v602_v10, 0.0 }
 0x189   : > { %v610_v13 = vrot.slane %v606_v12, 7 }
 0x18b   : > { %v611_v15 = vsel %vm607_vm4, 0.0, %v610_v13 }
 0x18c   : > { %v612_v16 = vmul.f32 %v611_v15, %v605_v59 }
 0x18e   : > { %v613_v18 = vadd.f32 %v612_v16, %v606_v12 }
 0x190   : > { %v618_v19 = vrot.slane %v613_v18, 6 }
 0x192   : > { %v619_v23 = vsel %vm615_vm7, 0.0, %v618_v19 }
 0x193   : > { %v620_v24 = vmul.f32 %v619_v23, %v614_v4 }
 0x195   : > { %v621_v26 = vadd.f32 %v620_v24, %v613_v18 }
 0x197   : > { %v626_v28 = vrot.slane %v621_v26, 4 }
 0x199   : > { %v627_v31 = vsel %vm623_vm8, 0.0, %v626_v28 }
 0x19a   : > { %v628_v33 = vmul.f32 %v627_v31, %v622_v17 }
 0x19c   : > { %v629_v34 = vadd.f32 %v628_v33, %v621_v26 }
 0x19d   : > { %665 = sbr.rel (%p866_p5) target bundleno = 420 (0x1a4), region = 56 }
 0x19e   : > { %v639_v37 = vadd.f32 %v638_v35, %v629_v34 }
 0x1a0   : > { %v658_v38 = vmul.f32 %v657_v36, %v639_v37  ;;  %661 = vst [vmem:[#allocation2 - $0x7] sm:$0x80] %v639_v37  ;;  %666 = vst [vmem:[%s1402_s13 - $0x7] sm:$0x80] (!%p866_p5), %v639_v37 }
 0x1a2   : > { %v659_v21 = vsel %vm1482_vm3, %v658_v38, 0.0 }
 0x1a3   : > { %660 = vst [vmem:[%s370_s0] sm:$0xff] %v659_v21 }
 0x1a4 PF: > { %s868_s1 = sshll.u32 %s1178_s28, 1  ;;  %s687_s29 = sshll.u32 %s370_s0, 4  ;;  %s1510_s29 = int_to_ptr.vmem [resolvable:$true] %s687_s29 }
 0x1a5   : > { %s683_s23 = sadd.s32 %s1174_s27, %s868_s1  ;;  %s1652_s10 = sand.u32 1, %s1166_s25  }
 0x1a6   : > { %s869_s26 = sshll.u32 %s683_s23, 7  ;;  %s668_s16 = scalar_lea.sflag [#allocation7], %s1652_s10 }
 0x1a7   : > { %s685_s30 = scalar_lea.hbm %s1607_s9, %s869_s26  ;;  %s1038_s18 = scalar_lea.vmem %s1510_s29, 128 }
 0x1a8   : > { %p1039_p6 = scmp.ne.s32.totalorder %s1510_s29, %s1038_s18  ;;  %s1195_s27 = smov [#allocation6]  }
 0x1a9   : > { %s1042_s17 = sshll.u32 %s1195_s27, 4  ;;  %s1043_s17 = int_to_ptr.vmem [resolvable:$false] %s1042_s17 }
 0x1aa   : > { %p1040_p7 = pnand %p1039_p6, %p1331_p13  ;;  %s1044_s0 = scalar_lea.vmem %s1043_s17, 256 }
 0x1ab   : > { %p1045_p11 = scmp.lt.s32.totalorder %s1510_s29, %s1043_s17  ;;  %p1046_p0 = scmp.lt.s32.totalorder %s1044_s0, %s1038_s18 }
 0x1ac   : > { %p1041_p10 = pneg %p1040_p7 }
 0x1ad   : > { %p1047_p12 = por %p1046_p0, %p1045_p11 }
 0x1af   : > { %p1048_p1 = pnand %p1047_p12, %p1041_p10 }
 0x1b1   : > { %1051 = shalt.err (!%p1048_p1)
}
 0x1b2   : > { %s1052_s20 = scalar_lea.hbm %s685_s30, 128  ;;  %s1056_s24 = scalar_lea.hbm %s1607_s9, 512 }
 0x1b3   : > { %p1053_p2 = scmp.ne.s32.totalorder %s685_s30, %s1052_s20  ;;  %p1057_p6 = scmp.lt.u32.totalorder %s685_s30, %s1607_s9 }
 0x1b4   : > { %p1058_p7 = scmp.lt.u32.totalorder %s1056_s24, %s1052_s20  ;;  %p1060_p3 = scmp.lt.u32.totalorder %s1052_s20, %s685_s30 }
 0x1b5   : > { %p1054_p4 = pnand %p1053_p2, %p1331_p13 }
 0x1b6   : > { %p1059_p9 = por %p1058_p7, %p1057_p6 }
 0x1b7   : > { %p1055_p5 = pneg %p1054_p4 }
 0x1b8   : > { %p1061_p11 = por %p1060_p3, %p1059_p9 }
 0x1ba   : > { %p1062_p10 = pnand %p1061_p11, %p1055_p5 }
 0x1bc   : > { %1065 = shalt.err (!%p1062_p10)
}
 0x1bd   : > { %873 = dma.vmem_to_hbm [thread:$0]  (%p1331_p13), %s1510_s29, 128, %s685_s30, %s668_s16  }
 0x1be   : > { %s870_s26 = sshll.u32 %s1178_s28, 4  ;;  %s700_s11 = sshll.u32 %s1402_s13, 4  ;;  %s701_s11 = int_to_ptr.vmem [resolvable:$true] %s700_s11 }
 0x1bf   : > { %s1654_s18 = sld [smem:[#allocation27_spill]]  ;;  %s1655_s17 = sand.u32 1, %s1154_s22  }
 0x1c0   : > { %s673_s0 = scalar_lea.sflag [#allocation9], %s1655_s17  ;;  %s1066_s20 = scalar_lea.vmem %s701_s11, 16 }
 0x1c1   : > { %p1067_p3 = scmp.ne.s32.totalorder %s701_s11, %s1066_s20  ;;  %s1196_s19 = smov [#allocation8]  }
 0x1c2   : > { %s1070_s21 = sshll.u32 %s1196_s19, 4  ;;  %s1071_s21 = int_to_ptr.vmem [resolvable:$false] %s1070_s21 }
 0x1c3   : > { %p1068_p9 = pnand %p1067_p3, %p1358_p8  ;;  %s1072_s12 = scalar_lea.vmem %s1071_s21, 32 }
 0x1c4   : > { %p1073_p13 = scmp.lt.s32.totalorder %s701_s11, %s1071_s21  ;;  %p1074_p12 = scmp.lt.s32.totalorder %s1072_s12, %s1066_s20 }
 0x1c5   : > { %s1538_s27 = scalar_lea.hbm %s1654_s18, %s870_s26  ;;  %p1069_p0 = pneg %p1068_p9 }
 0x1c6   : > { %p1075_p1 = por %p1074_p12, %p1073_p13 }
 0x1c8   : > { %p1076_p2 = pnand %p1075_p1, %p1069_p0 }
 0x1ca   : > { %1079 = shalt.err (!%p1076_p2)
}
 0x1cb   : > { %s1080_s28 = scalar_lea.hbm %s1538_s27, 16  ;;  %s1084_s30 = scalar_lea.hbm %s1654_s18, 32 }
 0x1cc   : > { %p1081_p4 = scmp.ne.s32.totalorder %s1538_s27, %s1080_s28  ;;  %p1085_p7 = scmp.lt.u32.totalorder %s1538_s27, %s1654_s18 }
 0x1cd   : > { %p1086_p11 = scmp.lt.u32.totalorder %s1084_s30, %s1080_s28  ;;  %p1088_p3 = scmp.lt.u32.totalorder %s1080_s28, %s1538_s27 }
 0x1ce   : > { %p1082_p5 = pnand %p1081_p4, %p1358_p8 }
 0x1cf   : > { %p1087_p10 = por %p1086_p11, %p1085_p7 }
 0x1d0   : > { %p1083_p6 = pneg %p1082_p5 }
 0x1d1   : > { %p1089_p9 = por %p1088_p3, %p1087_p10 }
 0x1d3   : > { %p1090_p0 = pnand %p1089_p9, %p1083_p6 }
 0x1d5   : > { %1093 = shalt.err (!%p1090_p0)
}
 0x1d6   : > { %874 = dma.vmem_to_hbm [thread:$0]  (%p1358_p8), %s701_s11, 16, %s1538_s27, %s673_s0  }
 0x1d7 PF: > { %s1656_s15 = sld [smem:[#allocation19_spill]]  ;;  %s1657_s1 = sld [smem:[#allocation15_spill]] }
 0x1d8   : > { %s1658_s26 = sld [smem:[#allocation22_spill]] }
 0x1dd   : > { %p884_p13 = scmp.ge.s32.totalorder %s1656_s15, 2  ;;  %s712_s14 = sand.u32 1, %s1657_s1  }
 0x1de   : > { %p1659_p12 = scmp.ne.s32.totalorder %s1658_s26, 0  ;;  %s713_s10 = scalar_lea.sflag [#allocation7], %s712_s14 }
 0x1e0   : > { %p878_p1 = pnand %p884_p13, %p1659_p12 }
 0x1e2   : > { %1141 = dma.done.wait (!%p878_p1), %s713_s10, 128  }
 0x1e3   : > { %1143 = vsyncadd (!%p878_p1), %s713_s10, 4294967168  ;;  %s1660_s17 = sld [smem:[#allocation13_spill]]  ;;  %s1661_s20 = sld [smem:[#allocation26_spill]] }
 0x1e9   : > { %s721_s19 = sand.u32 1, %s1660_s17   ;;  %p1662_p2 = scmp.ne.s32.totalorder %s1661_s20, 0 }
 0x1ea   : > { %s722_s21 = scalar_lea.sflag [#allocation9], %s721_s19 }
 0x1eb   : > { %p881_p4 = pnand %p884_p13, %p1662_p2 }
 0x1ed   : > { %1145 = dma.done.wait (!%p881_p4), %s722_s21, 16  }
 0x1ee   : > { %1147 = vsyncadd (!%p881_p4), %s722_s21, 4294967280  ;;  %s37_s11 = sadd.s32 1, %s1656_s15   ;;  %s1663_s23 = sld [smem:[#allocation14_spill]] }
 0x1ef   : > { %p34_p8 = scmp.ge.s32.totalorder %s37_s11, 6   ;;  %s1664_s27 = sld [smem:[#allocation24_spill]] }
 0x1f0   : > { %s1665_s0 = sld [smem:[#allocation16_spill]]  ;;  %s1666_s26 = sld [smem:[#allocation25_spill]] }
 0x1f1   : > { %s1667_s12 = sld [smem:[#allocation17_spill]]  ;;  %s1668_s28 = sld [smem:[#allocation18_spill]] }
 0x1f2   : > { %s1669_s29 = sld [smem:[#allocation20_spill]]  ;;  %s1670_s30 = sld [smem:[#allocation21_spill]] }
 0x1f3   : > { %s1671_s1 = smov %s1154_s22  ;;  %s1674_s24 = smov %s1166_s25 }
 0x1f4   : > { %s1672_s22 = smov %s1663_s23  ;;  %36 = sbr.rel (!%p34_p8) target bundleno = 35 (0x23), region = 114 }
 0x1f5   : > { %s1673_s23 = smov %s1664_s27 }
 0x1f6   : > { %s1675_s25 = smov %s1665_s0 }
 0x1f7   : > { %s1676_s27 = smov %s1667_s12 }
 0x1fb   :  { %726 = vsyncpa [#allocation7], 1 }
 0x1fc   :  { %728 = vsyncpa [#allocation7 + $0x1], 1 }
 0x1fd   :  { %729 = vsyncpa [#allocation9], 1 }
 0x1fe   :  { %731 = vsyncpa [#allocation9 + $0x1], 1 }

</bundles_post_ra>
